<compile_context>
chip_gen: v5e
topology: v5e:2x2
jax: 0.10.0
libtpu: 0.0.40
codegen_flags: <defaults>
</compile_context>

<pallas_src>
import jax
import jax.numpy as jnp
from jax.experimental import pallas as pl
from jax.experimental.pallas import tpu as pltpu


def _make_kernel(neg_slope):
    def dim_reduce_kernel(x_ref, w_ref, bias_ref, o_ref):
        # x_ref:    (C_in,  TL)   pixel tile of one image (channels x pixels)
        # w_ref:    (C_out, C_in) BN-folded conv weight, grid-invariant (VMEM-resident)
        # bias_ref: (C_out, 1)    folded BN bias (f32, added on the f32 accumulator)
        # o_ref:    (C_out, TL)   lane-dense output tile
        y = jnp.dot(w_ref[...], x_ref[...], preferred_element_type=jnp.float32)
        y = y + bias_ref[...]
        if neg_slope is not None:
            # neg_slope = 0.0 -> ReLU;  0.1 -> LeakyReLU(0.1)
            y = jnp.maximum(y, neg_slope * y)
        o_ref[...] = y.astype(o_ref.dtype)
    return dim_reduce_kernel


def _round_up(x, m):
    return (x + m - 1) // m * m


def _round_down_to(x, m):
    return max(m, (x // m) * m)


def _device_vmem_limit_bytes():
    """Per-generation scoped-VMEM target (v7x has only 64 MiB / TensorCore)."""
    kind = ""
    try:
        kind = jax.devices()[0].device_kind.lower()
    except Exception:
        pass
    if "v7" in kind:
        return 48 * 1024 * 1024          # v7x: 64 MiB physical per TC
    return 64 * 1024 * 1024              # v5e / v6e: 128 MiB physical


def dim_reduce_layer(x_nchw, conv_w, gamma, beta, running_mean, running_var,
                     eps=1e-5, nonlinear="relu", tl_target=2048):
    """x_nchw: (N, C_in, H, W); conv_w: (C_out, C_in) (1x1 kernel squeezed)."""
    N, C_in, H, W = x_nchw.shape
    C_out = conv_w.shape[0]
    HW = H * W
    cdt = x_nchw.dtype                    # data-path dtype (bf16 stays bf16)

    # ---- Fold BatchNorm (eval mode) into weight + per-channel bias (f32 math) ----
    scale = gamma.astype(jnp.float32) / jnp.sqrt(running_var.astype(jnp.float32) + eps)
    w_folded = (conv_w.astype(jnp.float32) * scale[:, None]).astype(cdt)   # (C_out, C_in)
    bias = (beta.astype(jnp.float32) - running_mean.astype(jnp.float32) * scale)
    bias = bias.reshape(C_out, 1)          # keep f32: added onto f32 MXU accumulator

    if nonlinear == "relu":
        neg_slope = 0.0
    elif nonlinear == "leakyrelu":
        neg_slope = 0.1
    else:
        neg_slope = None                   # no activation appended in the module

    # ---- VMEM budget / pixel-tile (TL) selection ---------------------------------
    itemsize = jnp.dtype(cdt).itemsize
    vmem_limit = _device_vmem_limit_bytes()
    weight_bytes = 2 * C_out * C_in * itemsize      # conservatively assume 2 buffers
    bias_bytes = C_out * 4
    slack = 4 * 1024 * 1024
    tile_budget = max(vmem_limit - weight_bytes - bias_bytes - slack, 2 * 1024 * 1024)
    bytes_per_pixel = 2 * (C_in + C_out) * itemsize  # double-buffered in + out tiles
    tl_cap = min(_round_down_to(tile_budget // bytes_per_pixel, 128), tl_target)

    if HW <= tl_cap:
        TL = HW            # one tile spans the pixel axis (block == full dim, legal)
    else:
        TL = tl_cap        # multiple of 128; ragged last tile is masked by Pallas

    # v7x has 2 TensorCores: keep >= 2 parallel grid steps when N == 1.
    if N == 1 and TL == HW and HW > 128:
        TL = min(tl_cap, _round_up((HW + 1) // 2, 128))

    grid = (N, pl.cdiv(HW, TL))

    # Pure reshape: no transpose, no dtype copy, no padding pass over HBM.
    x3 = x_nchw.reshape(N, C_in, HW)
    out_shape = jax.ShapeDtypeStruct((N, C_out, HW), cdt)

    compiler_params = pltpu.CompilerParams(
        dimension_semantics=("parallel", "parallel"),
        vmem_limit_bytes=vmem_limit,
    )

    kernel = _make_kernel(neg_slope)

    def build(single_buffer_weights):
        if single_buffer_weights:
            w_spec = pl.BlockSpec((C_out, C_in), lambda n, t: (0, 0),
                                  pipeline_mode=pl.Buffered(1))
            b_spec = pl.BlockSpec((C_out, 1), lambda n, t: (0, 0),
                                  pipeline_mode=pl.Buffered(1))
        else:
            w_spec = pl.BlockSpec((C_out, C_in), lambda n, t: (0, 0))
            b_spec = pl.BlockSpec((C_out, 1), lambda n, t: (0, 0))
        return pl.pallas_call(
            kernel,
            out_shape=out_shape,
            grid_spec=pltpu.PrefetchScalarGridSpec(
                num_scalar_prefetch=0,
                grid=grid,
                in_specs=[
                    pl.BlockSpec((None, C_in, TL), lambda n, t: (n, 0, t)),
                    w_spec,     # grid-invariant -> stays VMEM-resident
                    b_spec,     # grid-invariant -> stays VMEM-resident
                ],
                out_specs=pl.BlockSpec((None, C_out, TL), lambda n, t: (n, 0, t)),
            ),
            compiler_params=compiler_params,
        )

    try:
        out3 = build(True)(x3, w_folded, bias)
    except Exception:
        # pipeline_mode=pl.Buffered(1) unsupported in this jax build -> default buffering
        out3 = build(False)(x3, w_folded, bias)

    return out3.reshape(N, C_out, H, W)


def _reference(x, conv_w, gamma, beta, running_mean, running_var, eps=1e-5):
    y = jnp.einsum("nchw,oc->nohw", x, conv_w)
    scale = gamma / jnp.sqrt(running_var + eps)
    bias = beta - running_mean * scale
    y = y * scale[None, :, None, None] + bias[None, :, None, None]
    return jnp.maximum(y, 0.0)


if __name__ == "__main__":
    key = jax.random.PRNGKey(0)
    N, C_in, C_out, H, W = 2, 32, 16, 16, 16

    k_x, k_w, k_g, k_b, k_m, k_v = jax.random.split(key, 6)
    x = jax.random.normal(k_x, (N, C_in, H, W), dtype=jnp.float32)

    # Deterministic synthetic parameters (shapes from the module __init__).
    conv_w = jax.random.normal(k_w, (C_out, C_in), dtype=jnp.float32) * 0.1
    gamma = 1.0 + 0.1 * jax.random.normal(k_g, (C_out,), dtype=jnp.float32)
    beta = 0.1 * jax.random.normal(k_b, (C_out,), dtype=jnp.float32)
    running_mean = 0.1 * jax.random.normal(k_m, (C_out,), dtype=jnp.float32)
    running_var = jnp.abs(1.0 + 0.1 * jax.random.normal(k_v, (C_out,),
                                                        dtype=jnp.float32))

    out = dim_reduce_layer(x, conv_w, gamma, beta, running_mean, running_var)
    out = jax.block_until_ready(out)
    y_ref = _reference(x, conv_w, gamma, beta, running_mean, running_var)
    assert out.shape == (N, C_out, H, W)
    assert jnp.allclose(out, y_ref, atol=1e-4, rtol=1e-4)

    # Second shape: PCB-style tiny spatial map (HW not a multiple of 128) exercises
    # the full-extent pixel block + masked store path (no pad/slice anywhere).
    x2 = jax.random.normal(k_x, (N, C_in, 6, 1), dtype=jnp.float32)
    out2 = dim_reduce_layer(x2, conv_w, gamma, beta, running_mean, running_var)
    out2 = jax.block_until_ready(out2)
    y_ref2 = _reference(x2, conv_w, gamma, beta, running_mean, running_var)
    assert out2.shape == (N, C_out, 6, 1)
    assert jnp.allclose(out2, y_ref2, atol=1e-4, rtol=1e-4)

    print("KERNEL_OK")
</pallas_src>

<mosaic_0001>
module attributes {stable_mosaic.version = 11 : i64} {
  func.func @dim_reduce_kernel(%arg0: i32, %arg1: i32, %arg2: memref<1x32x256xf32, #tpu.memory_space<vmem>>, %arg3: memref<16x32xf32, #tpu.memory_space<vmem>>, %arg4: memref<16x1xf32, #tpu.memory_space<vmem>>, %arg5: memref<1x16x256xf32, #tpu.memory_space<vmem>>) attributes {dimension_semantics = [#tpu.dimension_semantics<parallel>, #tpu.dimension_semantics<parallel>], iteration_bounds = array<i64: 2, 1>, scalar_prefetch = 0 : i64, scratch_operands = 0 : i64, tpu.core_type = #tpu.core_type<tc>, window_params = [{transform_indices = @transform_0, window_bounds = array<i64: 1, 32, 256>}, {pipeline_mode = #tpu.pipeline_mode<synchronous>, transform_indices = @transform_1, window_bounds = array<i64: 16, 32>}, {pipeline_mode = #tpu.pipeline_mode<synchronous>, transform_indices = @transform_2, window_bounds = array<i64: 16, 1>}, {transform_indices = @transform_3, window_bounds = array<i64: 1, 16, 256>}]} {
    %c0 = arith.constant 0 : index
    %c0_0 = arith.constant 0 : index
    %0 = vector.load %arg3[%c0, %c0_0] : memref<16x32xf32, #tpu.memory_space<vmem>>, vector<16x32xf32>
    %c0_1 = arith.constant 0 : index
    %c0_2 = arith.constant 0 : index
    %c0_3 = arith.constant 0 : index
    %1 = vector.load %arg2[%c0_1, %c0_2, %c0_3] : memref<1x32x256xf32, #tpu.memory_space<vmem>>, vector<1x32x256xf32>
    %2 = vector.shape_cast %1 : vector<1x32x256xf32> to vector<32x256xf32>
    %cst = arith.constant dense<0.000000e+00> : vector<16x256xf32>
    %3 = tpu.matmul %0, %2, %cst {dimension_numbers = #tpu.dot_dimension_numbers<[1], [0], [0], [1], [0, 0, 1, 1], [], []>} : vector<16x32xf32>, vector<32x256xf32>, vector<16x256xf32> -> vector<16x256xf32>
    %c0_4 = arith.constant 0 : index
    %c0_5 = arith.constant 0 : index
    %4 = vector.load %arg4[%c0_4, %c0_5] : memref<16x1xf32, #tpu.memory_space<vmem>>, vector<16x1xf32>
    %5 = vector.broadcast %4 : vector<16x1xf32> to vector<16x256xf32>
    %6 = arith.addf %3, %5 : vector<16x256xf32>
    %cst_6 = arith.constant 0.000000e+00 : f32
    %7 = vector.broadcast %cst_6 : f32 to vector<16x256xf32>
    %8 = arith.mulf %7, %6 : vector<16x256xf32>
    %9 = arith.maximumf %6, %8 : vector<16x256xf32>
    %c0_7 = arith.constant 0 : index
    %c0_8 = arith.constant 0 : index
    %c0_9 = arith.constant 0 : index
    %10 = vector.load %arg5[%c0_7, %c0_8, %c0_9] : memref<1x16x256xf32, #tpu.memory_space<vmem>>, vector<1x16x256xf32>
    %11 = vector.shape_cast %10 : vector<1x16x256xf32> to vector<16x256xf32>
    %12 = vector.shape_cast %9 : vector<16x256xf32> to vector<1x16x256xf32>
    tpu.vector_store %arg5[%c0_7, %c0_8, %c0_9], %12 {strides = array<i32>} : memref<1x16x256xf32, #tpu.memory_space<vmem>>, vector<1x16x256xf32>,
    return
  }
  func.func @transform_0(%arg0: i32, %arg1: i32) -> (i32, i32, i32) {
    %c0_i32 = arith.constant 0 : i32
    %c0_i32_0 = arith.constant 0 : i32
    return %arg0, %c0_i32, %arg1 : i32, i32, i32
  }
  func.func @transform_1(%arg0: i32, %arg1: i32) -> (i32, i32) {
    %c0_i32 = arith.constant 0 : i32
    %c0_i32_0 = arith.constant 0 : i32
    %c0_i32_1 = arith.constant 0 : i32
    return %c0_i32, %c0_i32_0 : i32, i32
  }
  func.func @transform_2(%arg0: i32, %arg1: i32) -> (i32, i32) {
    %c0_i32 = arith.constant 0 : i32
    %c0_i32_0 = arith.constant 0 : i32
    %c0_i32_1 = arith.constant 0 : i32
    return %c0_i32, %c0_i32_0 : i32, i32
  }
  func.func @transform_3(%arg0: i32, %arg1: i32) -> (i32, i32, i32) {
    %c0_i32 = arith.constant 0 : i32
    %c0_i32_0 = arith.constant 0 : i32
    return %arg0, %c0_i32, %arg1 : i32, i32, i32
  }
}

module attributes {stable_mosaic.version = 11 : i64} {
  func.func @dim_reduce_kernel(%arg0: i32, %arg1: i32, %arg2: memref<1x32x256xf32, #tpu.memory_space<vmem>>, %arg3: memref<16x32xf32, #tpu.memory_space<vmem>>, %arg4: memref<16x1xf32, #tpu.memory_space<vmem>>, %arg5: memref<1x16x256xf32, #tpu.memory_space<vmem>>) attributes {dimension_semantics = [#tpu.dimension_semantics<parallel>, #tpu.dimension_semantics<parallel>], iteration_bounds = array<i64: 2, 1>, scalar_prefetch = 0 : i64, scratch_operands = 0 : i64, tpu.core_type = #tpu.core_type<tc>, window_params = [{transform_indices = @transform_0, window_bounds = array<i64: 1, 32, 256>}, {pipeline_mode = #tpu.pipeline_mode<synchronous>, transform_indices = @transform_1, window_bounds = array<i64: 16, 32>}, {pipeline_mode = #tpu.pipeline_mode<synchronous>, transform_indices = @transform_2, window_bounds = array<i64: 16, 1>}, {transform_indices = @transform_3, window_bounds = array<i64: 1, 16, 256>}]} {
    %c0 = arith.constant 0 : index
    %c0_0 = arith.constant 0 : index
    %0 = vector.load %arg3[%c0, %c0_0] : memref<16x32xf32, #tpu.memory_space<vmem>>, vector<16x32xf32>
    %c0_1 = arith.constant 0 : index
    %c0_2 = arith.constant 0 : index
    %c0_3 = arith.constant 0 : index
    %1 = vector.load %arg2[%c0_1, %c0_2, %c0_3] : memref<1x32x256xf32, #tpu.memory_space<vmem>>, vector<1x32x256xf32>
    %2 = vector.shape_cast %1 : vector<1x32x256xf32> to vector<32x256xf32>
    %cst = arith.constant dense<0.000000e+00> : vector<16x256xf32>
    %3 = tpu.matmul %0, %2, %cst {dimension_numbers = #tpu.dot_dimension_numbers<[1], [0], [0], [1], [0, 0, 1, 1], [], []>} : vector<16x32xf32>, vector<32x256xf32>, vector<16x256xf32> -> vector<16x256xf32>
    %c0_4 = arith.constant 0 : index
    %c0_5 = arith.constant 0 : index
    %4 = vector.load %arg4[%c0_4, %c0_5] : memref<16x1xf32, #tpu.memory_space<vmem>>, vector<16x1xf32>
    %5 = vector.broadcast %4 : vector<16x1xf32> to vector<16x256xf32>
    %6 = arith.addf %3, %5 : vector<16x256xf32>
    %cst_6 = arith.constant 0.000000e+00 : f32
    %7 = vector.broadcast %cst_6 : f32 to vector<16x256xf32>
    %8 = arith.mulf %7, %6 : vector<16x256xf32>
    %9 = arith.maximumf %6, %8 : vector<16x256xf32>
    %c0_7 = arith.constant 0 : index
    %c0_8 = arith.constant 0 : index
    %c0_9 = arith.constant 0 : index
    %10 = vector.load %arg5[%c0_7, %c0_8, %c0_9] : memref<1x16x256xf32, #tpu.memory_space<vmem>>, vector<1x16x256xf32>
    %11 = vector.shape_cast %10 : vector<1x16x256xf32> to vector<16x256xf32>
    %12 = vector.shape_cast %9 : vector<16x256xf32> to vector<1x16x256xf32>
    tpu.vector_store %arg5[%c0_7, %c0_8, %c0_9], %12 {strides = array<i32>} : memref<1x16x256xf32, #tpu.memory_space<vmem>>, vector<1x16x256xf32>,
    return
  }
  func.func @transform_0(%arg0: i32, %arg1: i32) -> (i32, i32, i32) {
    %c0_i32 = arith.constant 0 : i32
    %c0_i32_0 = arith.constant 0 : i32
    return %arg0, %c0_i32, %arg1 : i32, i32, i32
  }
  func.func @transform_1(%arg0: i32, %arg1: i32) -> (i32, i32) {
    %c0_i32 = arith.constant 0 : i32
    %c0_i32_0 = arith.constant 0 : i32
    %c0_i32_1 = arith.constant 0 : i32
    return %c0_i32, %c0_i32_0 : i32, i32
  }
  func.func @transform_2(%arg0: i32, %arg1: i32) -> (i32, i32) {
    %c0_i32 = arith.constant 0 : i32
    %c0_i32_0 = arith.constant 0 : i32
    %c0_i32_1 = arith.constant 0 : i32
    return %c0_i32, %c0_i32_0 : i32, i32
  }
  func.func @transform_3(%arg0: i32, %arg1: i32) -> (i32, i32, i32) {
    %c0_i32 = arith.constant 0 : i32
    %c0_i32_0 = arith.constant 0 : i32
    return %arg0, %c0_i32, %arg1 : i32, i32, i32
  }
}

</mosaic_0001>

<bundles_post_ra>
// kernel: tpu_custom_call.1
= control target key start
LH: loop header
LB: loop body
LE: loop exit
PB: predicated region body
PF: predicated region fallthrough
CT: control target
= control target key end

     0   :  { %8 = vsyncpa [#allocation3], 0  ;;  %s772_s0 = inlined_call_operand.hbm [shape: f32[2,32,256], index: 0, kind: input, shape index: {}]   ;;  %s773_s1 = inlined_call_operand.vmem [shape: f32[16,32], index: 1, kind: input, shape index: {}]   ;;  %s774_s2 = inlined_call_operand.vmem [shape: f32[16,1], index: 2, kind: input, shape index: {}]   ;;  %s775_s3 = inlined_call_operand.hbm [shape: f32[2,16,256], index: 3, kind: output, shape index: {}]  }
   0x1   :  { %10 = vsyncpa [#allocation3 + $0x1], 0 }
   0x2   :  { %11 = vsyncpa [#allocation4], 0 }
   0x3   :  { %13 = vsyncpa [#allocation4 + $0x1], 0  ;;  %s639_s12 = smov 0   ;;  %s641_s13 = smov 0  }
   0x4   :  { %s643_s14 = smov 0   ;;  %s645_s15 = smov 0  }
   0x5   :  { %s647_s16 = smov 0   ;;  %s649_s17 = smov 0  }
   0x6 LB: > { %s403_s18 = sadd.s32 4294967295, %s612_s17   ;;  %s404_s19 = sadd.s32 4294967294, %s612_s17   ;;  %s612_s17 = sphi %s649_s17, %s19_s17   ;;  %s608_s16 = sphi %s647_s16, %s784_s16   ;;  %s604_s15 = sphi %s645_s15, %s783_s15   ;;  %s600_s14 = sphi %s643_s14, %s782_s14   ;;  %s596_s13 = sphi %s641_s13, %s781_s13   ;;  %s592_s12 = sphi %s639_s12, %s780_s12  }
   0x7   : > { %s31_s20 = sadd.s32 1, %s608_s16  ;;  %s40_s21 = sadd.s32 1, %s600_s14 }
   0x8   : > { %p33_p0 = scmp.ge.s32.totalorder %s31_s20, 2  ;;  %p47_p1 = scmp.ne.s32.totalorder %s600_s14, %s596_s13 }
   0x9   : > { %p48_p2 = scmp.eq.s32.totalorder %s612_s17, 0  ;;  %p53_p3 = scmp.ne.s32.totalorder %s596_s13, %s592_s12 }
   0xa   : > { %s786_s20 = smov (%p33_p0, %s31_s20), 0  ;;  %p54_p5 = scmp.eq.s32.totalorder %s403_s18, 0 }
   0xb   : > { %p680_p4 = por %p48_p2, %p47_p1  ;;  %s35_s23 = ssub.s32 %s608_s16, %s786_s20 }
   0xc   : > { %p121_p6 = scmp.eq.s32.totalorder %s403_s18, 1  ;;  %p38_p7 = scmp.eq.s32.totalorder %s35_s23, 0 }
   0xd   : > { %p686_p8 = por %p54_p5, %p53_p3  ;;  %p127_p10 = scmp.eq.s32.totalorder %s404_s19, 1 }
   0xe   : > { %p690_p9 = por %p121_p6, %p47_p1  ;;  %p406_p12 = scmp.ge.s32.totalorder %s612_s17, 2 }
   0xf   : > { %s695_s26 = scalar_select %p38_p7, %s600_s14, %s40_s21  }
  0x10   : > { %p697_p11 = por %p127_p10, %p53_p3  ;;  %p444_p13 = scmp.lt.s32.totalorder %s612_s17, 2 }
  0x11   : > { %s153_s28 = sand.u32 1, %s600_s14   ;;  %s422_s30 = sshll.u32 %s608_s16, 6 }
  0x12   : > { %s407_s29 = sshll.u32 %s153_s28, 6  ;;  %s164_s6 = scalar_lea.hbm %s772_s0, %s422_s30 }
  0x13   : > { %s157_s7 = scalar_lea.vmem [#allocation2], %s407_s29  ;;  %s165_s9 = sshll.u32 %s164_s6, 4  ;;  %s166_s9 = int_to_ptr.hbm [resolvable:$true] %s165_s9 }
  0x14   : > { %s167_s8 = sshll.u32 %s157_s7, 4  ;;  %p437_p0 = pnand %p444_p13, %p680_p4  ;;  %s168_s8 = int_to_ptr.vmem [resolvable:$true] %s167_s8 }
  0x15   : > { %p410_p1 = scmp.ge.s32.totalorder %s612_s17, 1  ;;  %s154_s10 = scalar_lea.sflag [#allocation3], %s153_s28 }
  0x16   : > { %s614_s11 = smov 256   ;;  %s615_s18 = smov 16  }
  0x17   : > { %439 = dma.hbm_to_vmem [thread:$0]  (!%p437_p0), %s166_s9, 1024, %s168_s8, %s154_s10, %s614_s11, %s614_s11, %s615_s18  }
  0x18   : > { %p175_p2 = scmp.lt.s32.totalorder %s612_s17, 3 }
  0x1a   : > { %p176_p3 = pnand %p410_p1, %p175_p2 }
  0x1b   : > { %s713_s19 = sand.u32 (!%p176_p3), 1, %s596_s13  }
  0x1c   : > { %179 = sbr.rel (%p176_p3) target bundleno = 187 (0xbb), region = 32  ;;  %s411_s21 = sshll.u32 (!%p176_p3), %s713_s19, 6 }
  0x1d   : > { %s182_s23 = scalar_lea.sflag (!%p176_p3), [#allocation3], %s713_s19  ;;  %s185_s29 = scalar_lea.vmem (!%p176_p3), [#allocation2], %s411_s21 }
  0x21   : > { %583 = dma.done.wait (%p686_p8), %s182_s23, 1024  }
  0x22   : > { %585 = vsyncadd (%p686_p8), %s182_s23, 4294966272  ;;  %v616_v0 = vmov 0   ;;  %v219_v1 = vld [vmem:[%s185_s29 + $0x30] sm:$0xff]  ;;  %v220_v2 = vld [vmem:[%s185_s29 + $0x38] sm:$0xff]  ;;  %vm233_vm0 = vcmask 261120   ;;  %s412_s8 = sshll.u32 %s713_s19, 5 }
  0x23   : > { %499 = vset.pattern.permute.xlu0 %v616_v0  ;;  %v217_v3 = vld [vmem:[%s185_s29 + $0x20] sm:$0xff]  ;;  %252 = vmatpush.msra.mxu0 %v219_v1  ;;  %v218_v4 = vld [vmem:[%s185_s29 + $0x28] sm:$0xff]  ;;  %v215_v5 = vld [vmem:[%s185_s29 + $0x10] sm:$0xff]  ;;  %s423_s9 = sshll.u32 %s604_s15, 5  ;;  %s208_s21 = scalar_lea.vmem [#allocation5], %s412_s8 }
  0x24   : > { %424 = vmatpush.msra.mxu2 %v219_v1  ;;  %275 = vmatpush.msra.mxu1 %v220_v2  ;;  %v216_v6 = vld [vmem:[%s185_s29 + $0x18] sm:$0xff]  ;;  %v213_v7 = vld [vmem:[%s185_s29] sm:$0xff]  ;;  %v214_v8 = vld [vmem:[%s185_s29 + $0x8] sm:$0xff]  ;;  %s312_s18 = scalar_lea.hbm %s775_s3, %s423_s9  ;;  %s313_s23 = sshll.u32 %s208_s21, 4  ;;  %s314_s23 = int_to_ptr.vmem [resolvable:$true] %s313_s23 }
  0x25   : > { %428 = vmatpush.msra.mxu3 %v220_v2  ;;  %253 = vmatpush.msra.mxu0 %v217_v3  ;;  %v211_v9 = vld [vmem:[%s773_s1] sm:$0xff]  ;;  %v212_v10 = vld [vmem:[%s773_s1 + $0x8] sm:$0xff]  ;;  %s315_s15 = sshll.u32 %s312_s18, 4  ;;  %s299_s29 = scalar_lea.sflag [#allocation4], %s713_s19  ;;  %s316_s15 = int_to_ptr.hbm [resolvable:$true] %s315_s15 }
  0x26   : > { %425 = vmatpush.msra.mxu2 %v217_v3  ;;  %276 = vmatpush.msra.mxu1 %v218_v4  ;;  %v221_v11 = vld [vmem:[%s774_s2] sm:$0xff]  ;;  %v222_v12 = vld [vmem:[%s774_s2 + $0x8] sm:$0xff]  ;;  %s544_s22 = sshra.s32 %s316_s15, 4  ;;  %s550_s4 = scalar_lea.hbm %s775_s3, 64  ;;  %s545_s22 = int_to_ptr.hbm [resolvable:$true] %s544_s22 }
  0x27   : > { %429 = vmatpush.msra.mxu3 %v218_v4  ;;  %254 = vmatpush.msra.mxu0 %v215_v5  ;;  %s546_s24 = scalar_lea.hbm %s545_s22, 32  ;;  %p551_p7 = scmp.lt.s32.totalorder %s545_s22, %s775_s3 }
  0x28   : > { %426 = vmatpush.msra.mxu2 %v215_v5  ;;  %277 = vmatpush.msra.mxu1 %v216_v6  ;;  %p547_p4 = scmp.ne.s32.totalorder %s545_s22, %s546_s24  ;;  %p552_p8 = scmp.lt.s32.totalorder %s550_s4, %s546_s24 }
  0x29   : > { %430 = vmatpush.msra.mxu3 %v216_v6  ;;  %255 = vmatpush.msra.mxu0 %v213_v7 }
  0x2a   : > { %427 = vmatpush.msra.mxu2 %v213_v7  ;;  %278 = vmatpush.msra.mxu1 %v214_v8  ;;  %p548_p5 = pnand %p547_p4, %p690_p9  ;;  %p553_p10 = por %p552_p8, %p551_p7 }
  0x2b   : > { %431 = vmatpush.msra.mxu3 %v214_v8  ;;  %413 = vmatmul.msk.f32.vlgmr.msra.gmra.mxu0 %vm233_vm0, %v211_v9 }
  0x2c   : > { %414 = vmatmul.msk.f32.vlgmr.msra.gmra.mxu2 %vm233_vm0, %v212_v10  ;;  %415 = vmatmul.msk.f32.vlgmr.msra.gmra.mxu1 %vm233_vm0, %v211_v9  ;;  %p549_p6 = pneg %p548_p5 }
  0x2d   : > { %416 = vmatmul.msk.f32.vlgmr.msra.gmra.mxu3 %vm233_vm0, %v212_v10  ;;  %225 = vperm.xlu0 %499, %v221_v11  }
  0x2e   : > { %p554_p13 = pnand %p553_p10, %p549_p6 }
  0x35   : > { %230 = vperm.xlu0 %499, %v222_v12  }
  0x9f   : > { %v226_v13 = vpop.permute.xlu0 %225 }
  0xa7   : > { %v231_v21 = vpop.permute.xlu0 %230 }
  0xa8   : > { %v257_v14 = vpop.f32.mrf.mxu0 }
  0xa9   : > { %v258_v15 = vadd.f32 %v257_v14, %v226_v13  ;;  %v280_v16 = vpop.f32.mrf.mxu1 }
  0xaa   : > { %v281_v17 = vadd.f32 %v280_v16, %v226_v13 }
  0xab   : > { %v286_v18 = vmul.f32 0.0, %v258_v15 }
  0xac   : > { %v287_v19 = vmul.f32 0.0, %v281_v17 }
  0xad   : > { %v290_v20 = vmax.f32 %v258_v15, %v286_v18 }
  0xae   : > { %v291_v22 = vmax.f32 %v281_v17, %v287_v19 }
  0xaf   : > { %v260_v23 = vpop.f32.mrf.mxu2  ;;  %294 = vst [vmem:[%s208_s21] sm:$0xff] %v290_v20 }
  0xb0   : > { %v261_v24 = vadd.f32 %v260_v23, %v231_v21  ;;  %v283_v25 = vpop.f32.mrf.mxu3  ;;  %295 = vst [vmem:[%s208_s21 + $0x8] sm:$0xff] %v291_v22 }
  0xb1   : > { %v284_v26 = vadd.f32 %v283_v25, %v231_v21 }
  0xb2   : > { %v288_v27 = vmul.f32 0.0, %v261_v24 }
  0xb3   : > { %v289_v28 = vmul.f32 0.0, %v284_v26 }
  0xb4   : > { %v292_v29 = vmax.f32 %v261_v24, %v288_v27 }
  0xb5   : > { %v293_v30 = vmax.f32 %v284_v26, %v289_v28 }
  0xb6   : > { %296 = vst [vmem:[%s208_s21 + $0x10] sm:$0xff] %v292_v29 }
  0xb7   : > { %297 = vst [vmem:[%s208_s21 + $0x18] sm:$0xff] %v293_v30 }
  0xb8   : > { %557 = shalt.err (!%p554_p13)
}
  0xb9   : > { %s617_s19 = smov 256   ;;  %s618_s7 = smov 16  }
  0xba   : > { %434 = dma.vmem_to_hbm [thread:$0]  (%p690_p9), %s314_s23, 512, %s316_s15, %s299_s29, %s617_s19, %s617_s19, %s618_s7  }
  0xbb PF: > { %s330_s8 = sand.u32 1, %s592_s12   ;;  %p441_p0 = pnand %p406_p12, %p697_p11 }
  0xbc   : > { %s331_s9 = scalar_lea.sflag [#allocation4], %s330_s8 }
  0xbd   : > { %p442_p1 = pneg %p441_p0 }
  0xbf   : > { %587 = dma.done.wait (%p442_p1), %s331_s9, 512  }
  0xc0   : > { %589 = vsyncadd (%p442_p1), %s331_s9, 4294966784  ;;  %s19_s17 = sadd.s32 1, %s612_s17   ;;  %s780_s12 = smov %s596_s13 }
  0xc1   : > { %p16_p2 = scmp.ge.s32.totalorder %s19_s17, 4   ;;  %s781_s13 = smov %s600_s14 }
  0xc2   : > { %s782_s14 = smov %s695_s26  ;;  %s783_s15 = smov %s608_s16 }
  0xc3   : > { %s784_s16 = smov %s786_s20  ;;  %18 = sbr.rel (!%p16_p2) target bundleno = 6 (0x6), region = 77 }
  0xc8   :  { %337 = vsyncpa [#allocation3], 1 }
  0xc9   :  { %339 = vsyncpa [#allocation3 + $0x1], 1 }
  0xca   :  { %340 = vsyncpa [#allocation4], 1 }
  0xcb   :  { %342 = vsyncpa [#allocation4 + $0x1], 1 }

// kernel: tpu_custom_call.1
= control target key start
LH: loop header
LB: loop body
LE: loop exit
PB: predicated region body
PF: predicated region fallthrough
CT: control target
= control target key end

     0   :  { %8 = vsyncpa [#allocation3], 0  ;;  %s772_s0 = inlined_call_operand.hbm [shape: f32[2,32,256], index: 0, kind: input, shape index: {}]   ;;  %s773_s1 = inlined_call_operand.vmem [shape: f32[16,32], index: 1, kind: input, shape index: {}]   ;;  %s774_s2 = inlined_call_operand.vmem [shape: f32[16,1], index: 2, kind: input, shape index: {}]   ;;  %s775_s3 = inlined_call_operand.hbm [shape: f32[2,16,256], index: 3, kind: output, shape index: {}]  }
   0x1   :  { %10 = vsyncpa [#allocation3 + $0x1], 0 }
   0x2   :  { %11 = vsyncpa [#allocation4], 0 }
   0x3   :  { %13 = vsyncpa [#allocation4 + $0x1], 0  ;;  %s639_s12 = smov 0   ;;  %s641_s13 = smov 0  }
   0x4   :  { %s643_s14 = smov 0   ;;  %s645_s15 = smov 0  }
   0x5   :  { %s647_s16 = smov 0   ;;  %s649_s17 = smov 0  }
   0x6 LB: > { %s403_s18 = sadd.s32 4294967295, %s612_s17   ;;  %s404_s19 = sadd.s32 4294967294, %s612_s17   ;;  %s612_s17 = sphi %s649_s17, %s19_s17   ;;  %s608_s16 = sphi %s647_s16, %s784_s16   ;;  %s604_s15 = sphi %s645_s15, %s783_s15   ;;  %s600_s14 = sphi %s643_s14, %s782_s14   ;;  %s596_s13 = sphi %s641_s13, %s781_s13   ;;  %s592_s12 = sphi %s639_s12, %s780_s12  }
   0x7   : > { %s31_s20 = sadd.s32 1, %s608_s16  ;;  %s40_s21 = sadd.s32 1, %s600_s14 }
   0x8   : > { %p33_p0 = scmp.ge.s32.totalorder %s31_s20, 2  ;;  %p47_p1 = scmp.ne.s32.totalorder %s600_s14, %s596_s13 }
   0x9   : > { %p48_p2 = scmp.eq.s32.totalorder %s612_s17, 0  ;;  %p53_p3 = scmp.ne.s32.totalorder %s596_s13, %s592_s12 }
   0xa   : > { %s786_s20 = smov (%p33_p0, %s31_s20), 0  ;;  %p54_p5 = scmp.eq.s32.totalorder %s403_s18, 0 }
   0xb   : > { %p680_p4 = por %p48_p2, %p47_p1  ;;  %s35_s23 = ssub.s32 %s608_s16, %s786_s20 }
   0xc   : > { %p121_p6 = scmp.eq.s32.totalorder %s403_s18, 1  ;;  %p38_p7 = scmp.eq.s32.totalorder %s35_s23, 0 }
   0xd   : > { %p686_p8 = por %p54_p5, %p53_p3  ;;  %p127_p10 = scmp.eq.s32.totalorder %s404_s19, 1 }
   0xe   : > { %p690_p9 = por %p121_p6, %p47_p1  ;;  %p406_p12 = scmp.ge.s32.totalorder %s612_s17, 2 }
   0xf   : > { %s695_s26 = scalar_select %p38_p7, %s600_s14, %s40_s21  }
  0x10   : > { %p697_p11 = por %p127_p10, %p53_p3  ;;  %p444_p13 = scmp.lt.s32.totalorder %s612_s17, 2 }
  0x11   : > { %s153_s28 = sand.u32 1, %s600_s14   ;;  %s422_s30 = sshll.u32 %s608_s16, 6 }
  0x12   : > { %s407_s29 = sshll.u32 %s153_s28, 6  ;;  %s164_s6 = scalar_lea.hbm %s772_s0, %s422_s30 }
  0x13   : > { %s157_s7 = scalar_lea.vmem [#allocation2], %s407_s29  ;;  %s165_s9 = sshll.u32 %s164_s6, 4  ;;  %s166_s9 = int_to_ptr.hbm [resolvable:$true] %s165_s9 }
  0x14   : > { %s167_s8 = sshll.u32 %s157_s7, 4  ;;  %p437_p0 = pnand %p444_p13, %p680_p4  ;;  %s168_s8 = int_to_ptr.vmem [resolvable:$true] %s167_s8 }
  0x15   : > { %p410_p1 = scmp.ge.s32.totalorder %s612_s17, 1  ;;  %s154_s10 = scalar_lea.sflag [#allocation3], %s153_s28 }
  0x16   : > { %s614_s11 = smov 256   ;;  %s615_s18 = smov 16  }
  0x17   : > { %439 = dma.hbm_to_vmem [thread:$0]  (!%p437_p0), %s166_s9, 1024, %s168_s8, %s154_s10, %s614_s11, %s614_s11, %s615_s18  }
  0x18   : > { %p175_p2 = scmp.lt.s32.totalorder %s612_s17, 3 }
  0x1a   : > { %p176_p3 = pnand %p410_p1, %p175_p2 }
  0x1b   : > { %s713_s19 = sand.u32 (!%p176_p3), 1, %s596_s13  }
  0x1c   : > { %179 = sbr.rel (%p176_p3) target bundleno = 187 (0xbb), region = 32  ;;  %s411_s21 = sshll.u32 (!%p176_p3), %s713_s19, 6 }
  0x1d   : > { %s182_s23 = scalar_lea.sflag (!%p176_p3), [#allocation3], %s713_s19  ;;  %s185_s29 = scalar_lea.vmem (!%p176_p3), [#allocation2], %s411_s21 }
  0x21   : > { %583 = dma.done.wait (%p686_p8), %s182_s23, 1024  }
  0x22   : > { %585 = vsyncadd (%p686_p8), %s182_s23, 4294966272  ;;  %v616_v0 = vmov 0   ;;  %v219_v1 = vld [vmem:[%s185_s29 + $0x30] sm:$0xff]  ;;  %v220_v2 = vld [vmem:[%s185_s29 + $0x38] sm:$0xff]  ;;  %vm233_vm0 = vcmask 261120   ;;  %s412_s8 = sshll.u32 %s713_s19, 5 }
  0x23   : > { %499 = vset.pattern.permute.xlu0 %v616_v0  ;;  %v217_v3 = vld [vmem:[%s185_s29 + $0x20] sm:$0xff]  ;;  %252 = vmatpush.msra.mxu0 %v219_v1  ;;  %v218_v4 = vld [vmem:[%s185_s29 + $0x28] sm:$0xff]  ;;  %v215_v5 = vld [vmem:[%s185_s29 + $0x10] sm:$0xff]  ;;  %s423_s9 = sshll.u32 %s604_s15, 5  ;;  %s208_s21 = scalar_lea.vmem [#allocation5], %s412_s8 }
  0x24   : > { %424 = vmatpush.msra.mxu2 %v219_v1  ;;  %275 = vmatpush.msra.mxu1 %v220_v2  ;;  %v216_v6 = vld [vmem:[%s185_s29 + $0x18] sm:$0xff]  ;;  %v213_v7 = vld [vmem:[%s185_s29] sm:$0xff]  ;;  %v214_v8 = vld [vmem:[%s185_s29 + $0x8] sm:$0xff]  ;;  %s312_s18 = scalar_lea.hbm %s775_s3, %s423_s9  ;;  %s313_s23 = sshll.u32 %s208_s21, 4  ;;  %s314_s23 = int_to_ptr.vmem [resolvable:$true] %s313_s23 }
  0x25   : > { %428 = vmatpush.msra.mxu3 %v220_v2  ;;  %253 = vmatpush.msra.mxu0 %v217_v3  ;;  %v211_v9 = vld [vmem:[%s773_s1] sm:$0xff]  ;;  %v212_v10 = vld [vmem:[%s773_s1 + $0x8] sm:$0xff]  ;;  %s315_s15 = sshll.u32 %s312_s18, 4  ;;  %s299_s29 = scalar_lea.sflag [#allocation4], %s713_s19  ;;  %s316_s15 = int_to_ptr.hbm [resolvable:$true] %s315_s15 }
  0x26   : > { %425 = vmatpush.msra.mxu2 %v217_v3  ;;  %276 = vmatpush.msra.mxu1 %v218_v4  ;;  %v221_v11 = vld [vmem:[%s774_s2] sm:$0xff]  ;;  %v222_v12 = vld [vmem:[%s774_s2 + $0x8] sm:$0xff]  ;;  %s544_s22 = sshra.s32 %s316_s15, 4  ;;  %s550_s4 = scalar_lea.hbm %s775_s3, 64  ;;  %s545_s22 = int_to_ptr.hbm [resolvable:$true] %s544_s22 }
  0x27   : > { %429 = vmatpush.msra.mxu3 %v218_v4  ;;  %254 = vmatpush.msra.mxu0 %v215_v5  ;;  %s546_s24 = scalar_lea.hbm %s545_s22, 32  ;;  %p551_p7 = scmp.lt.s32.totalorder %s545_s22, %s775_s3 }
  0x28   : > { %426 = vmatpush.msra.mxu2 %v215_v5  ;;  %277 = vmatpush.msra.mxu1 %v216_v6  ;;  %p547_p4 = scmp.ne.s32.totalorder %s545_s22, %s546_s24  ;;  %p552_p8 = scmp.lt.s32.totalorder %s550_s4, %s546_s24 }
  0x29   : > { %430 = vmatpush.msra.mxu3 %v216_v6  ;;  %255 = vmatpush.msra.mxu0 %v213_v7 }
  0x2a   : > { %427 = vmatpush.msra.mxu2 %v213_v7  ;;  %278 = vmatpush.msra.mxu1 %v214_v8  ;;  %p548_p5 = pnand %p547_p4, %p690_p9  ;;  %p553_p10 = por %p552_p8, %p551_p7 }
  0x2b   : > { %431 = vmatpush.msra.mxu3 %v214_v8  ;;  %413 = vmatmul.msk.f32.vlgmr.msra.gmra.mxu0 %vm233_vm0, %v211_v9 }
  0x2c   : > { %414 = vmatmul.msk.f32.vlgmr.msra.gmra.mxu2 %vm233_vm0, %v212_v10  ;;  %415 = vmatmul.msk.f32.vlgmr.msra.gmra.mxu1 %vm233_vm0, %v211_v9  ;;  %p549_p6 = pneg %p548_p5 }
  0x2d   : > { %416 = vmatmul.msk.f32.vlgmr.msra.gmra.mxu3 %vm233_vm0, %v212_v10  ;;  %225 = vperm.xlu0 %499, %v221_v11  }
  0x2e   : > { %p554_p13 = pnand %p553_p10, %p549_p6 }
  0x35   : > { %230 = vperm.xlu0 %499, %v222_v12  }
  0x9f   : > { %v226_v13 = vpop.permute.xlu0 %225 }
  0xa7   : > { %v231_v21 = vpop.permute.xlu0 %230 }
  0xa8   : > { %v257_v14 = vpop.f32.mrf.mxu0 }
  0xa9   : > { %v258_v15 = vadd.f32 %v257_v14, %v226_v13  ;;  %v280_v16 = vpop.f32.mrf.mxu1 }
  0xaa   : > { %v281_v17 = vadd.f32 %v280_v16, %v226_v13 }
  0xab   : > { %v286_v18 = vmul.f32 0.0, %v258_v15 }
  0xac   : > { %v287_v19 = vmul.f32 0.0, %v281_v17 }
  0xad   : > { %v290_v20 = vmax.f32 %v258_v15, %v286_v18 }
  0xae   : > { %v291_v22 = vmax.f32 %v281_v17, %v287_v19 }
  0xaf   : > { %v260_v23 = vpop.f32.mrf.mxu2  ;;  %294 = vst [vmem:[%s208_s21] sm:$0xff] %v290_v20 }
  0xb0   : > { %v261_v24 = vadd.f32 %v260_v23, %v231_v21  ;;  %v283_v25 = vpop.f32.mrf.mxu3  ;;  %295 = vst [vmem:[%s208_s21 + $0x8] sm:$0xff] %v291_v22 }
  0xb1   : > { %v284_v26 = vadd.f32 %v283_v25, %v231_v21 }
  0xb2   : > { %v288_v27 = vmul.f32 0.0, %v261_v24 }
  0xb3   : > { %v289_v28 = vmul.f32 0.0, %v284_v26 }
  0xb4   : > { %v292_v29 = vmax.f32 %v261_v24, %v288_v27 }
  0xb5   : > { %v293_v30 = vmax.f32 %v284_v26, %v289_v28 }
  0xb6   : > { %296 = vst [vmem:[%s208_s21 + $0x10] sm:$0xff] %v292_v29 }
  0xb7   : > { %297 = vst [vmem:[%s208_s21 + $0x18] sm:$0xff] %v293_v30 }
  0xb8   : > { %557 = shalt.err (!%p554_p13)
}
  0xb9   : > { %s617_s19 = smov 256   ;;  %s618_s7 = smov 16  }
  0xba   : > { %434 = dma.vmem_to_hbm [thread:$0]  (%p690_p9), %s314_s23, 512, %s316_s15, %s299_s29, %s617_s19, %s617_s19, %s618_s7  }
  0xbb PF: > { %s330_s8 = sand.u32 1, %s592_s12   ;;  %p441_p0 = pnand %p406_p12, %p697_p11 }
  0xbc   : > { %s331_s9 = scalar_lea.sflag [#allocation4], %s330_s8 }
  0xbd   : > { %p442_p1 = pneg %p441_p0 }
  0xbf   : > { %587 = dma.done.wait (%p442_p1), %s331_s9, 512  }
  0xc0   : > { %589 = vsyncadd (%p442_p1), %s331_s9, 4294966784  ;;  %s19_s17 = sadd.s32 1, %s612_s17   ;;  %s780_s12 = smov %s596_s13 }
  0xc1   : > { %p16_p2 = scmp.ge.s32.totalorder %s19_s17, 4   ;;  %s781_s13 = smov %s600_s14 }
  0xc2   : > { %s782_s14 = smov %s695_s26  ;;  %s783_s15 = smov %s608_s16 }
  0xc3   : > { %s784_s16 = smov %s786_s20  ;;  %18 = sbr.rel (!%p16_p2) target bundleno = 6 (0x6), region = 77 }
  0xc8   :  { %337 = vsyncpa [#allocation3], 1 }
  0xc9   :  { %339 = vsyncpa [#allocation3 + $0x1], 1 }
  0xca   :  { %340 = vsyncpa [#allocation4], 1 }
  0xcb   :  { %342 = vsyncpa [#allocation4 + $0x1], 1 }

</bundles_post_ra>
